<compile_context>
chip_gen: v5e
topology: v5e:2x2
jax: 0.10.0
libtpu: 0.0.40
codegen_flags: <defaults>
</compile_context>

<pallas_src>
import functools

import jax
import jax.numpy as jnp
from jax.experimental import pallas as pl
from jax.experimental.pallas import tpu as pltpu

_SUBLANE = 8  # second-minor block dim must be a multiple of this (or equal full dim)


def _round_up(n, m):
    return ((n + m - 1) // m) * m


def _fcseq_kernel(*refs, n_layers):
    """refs = (x_ref, w0, b0, w1, b1, ..., o_ref). Whole MLP on one row tile."""
    x_ref = refs[0]
    o_ref = refs[1 + 2 * n_layers]

    h = x_ref[...].astype(jnp.float32)
    for i in range(n_layers):
        w = refs[1 + 2 * i][...]
        b = refs[2 + 2 * i][...]
        # MXU matmul with f32 accumulation; bias (1, n) broadcasts over rows.
        h = jnp.dot(h, w, preferred_element_type=jnp.float32) + b
        if i != n_layers - 1:
            h = jnp.sin(h)
    o_ref[...] = h.astype(o_ref.dtype)


def _pick_row_tile(batch, row_tile):
    """Row tile: multiple of 8, as fat as possible, but >=2 grid steps if batch allows
    (v7x shards the 'parallel' batch axis across its 2 TensorCores)."""
    rt = _round_up(min(row_tile, _round_up(batch, _SUBLANE)), _SUBLANE)
    if pl.cdiv(batch, rt) < 2 and batch > _SUBLANE:
        rt = _round_up(pl.cdiv(batch, 2), _SUBLANE)
    return rt


def _vmem_limit_bytes(params, rt, in_f, out_f):
    """Explicit scoped-VMEM budget: double-buffered x/out tiles + resident params
    (pipeline allocates 2 buffers even for constant index maps) + per-layer temps."""
    itemsize = 4  # f32
    widths = [in_f] + [w.shape[1] for w, _ in params]
    weight_bytes = sum((w.size + b.size) * itemsize for w, b in params)
    io_tile_bytes = rt * (in_f + out_f) * itemsize
    act_bytes = rt * max(widths) * itemsize * len(params)
    est = 2 * weight_bytes + 2 * io_tile_bytes + act_bytes
    return int(min(max(4 * est, 16 << 20), 128 << 20))


def fcseq_forward(x, params, *, row_tile=1024):
    """Pallas FCSeq.forward: linear -> sin -> ... -> linear (no act on last layer).

    x: (batch, in_features) f32.
    params: list of (W, b) with W (in_features, out_features), b (1, out_features).
    """
    n_layers = len(params)
    if n_layers == 0:
        return x

    batch, in_f = x.shape
    assert params[0][0].shape[0] == in_f, "x feature dim must match first layer fan_in"
    out_f = params[-1][0].shape[1]

    rt = _pick_row_tile(batch, row_tile)
    grid = (pl.cdiv(batch, rt),)

    # x tile: (rt, in_f) -- in_f equals the full array dim, so no lane padding needed.
    in_specs = [pl.BlockSpec((rt, in_f), lambda i: (i, 0))]
    args = [x]
    for w, b in params:
        k, n = w.shape
        # Full-extent blocks with constant index_map -> params stay resident in VMEM.
        in_specs.append(pl.BlockSpec((k, n), lambda i: (0, 0)))
        in_specs.append(pl.BlockSpec((1, n), lambda i: (0, 0)))
        args.append(w)
        args.append(b)

    return pl.pallas_call(
        functools.partial(_fcseq_kernel, n_layers=n_layers),
        out_shape=jax.ShapeDtypeStruct((batch, out_f), x.dtype),
        grid_spec=pl.GridSpec(
            grid=grid,
            in_specs=in_specs,
            out_specs=pl.BlockSpec((rt, out_f), lambda i: (i, 0)),
        ),
        compiler_params=pltpu.CompilerParams(
            dimension_semantics=("parallel",),  # batch tiles independent -> 2 TCs on v7x
            vmem_limit_bytes=_vmem_limit_bytes(params, rt, in_f, out_f),
        ),
    )(*args)


def fcseq_reference(x, params):
    n_layers = len(params)
    for i, (w, b) in enumerate(params):
        x = x @ w + b
        if i != n_layers - 1:
            x = jnp.sin(x)
    return x


def init_params(key, neurons):
    """Deterministic init matching nn.Linear's U(-1/sqrt(fan_in), 1/sqrt(fan_in))."""
    params = []
    for i in range(len(neurons) - 1):
        fan_in, fan_out = neurons[i], neurons[i + 1]
        key, kw, kb = jax.random.split(key, 3)
        bound = 1.0 / (fan_in ** 0.5)
        w = jax.random.uniform(kw, (fan_in, fan_out), jnp.float32, -bound, bound)
        b = jax.random.uniform(kb, (1, fan_out), jnp.float32, -bound, bound)
        params.append((w, b))
    return params


if __name__ == "__main__":
    key = jax.random.PRNGKey(0)
    neurons = [16, 32, 32, 8]  # FCSeq(neurons): 3 Linear layers, sin between them
    key, kx, kp, kx2 = jax.random.split(key, 4)
    params = init_params(kp, neurons)

    # Small-shape correctness check (single row tile, grid=(1,)).
    batch = 8
    x = jax.random.normal(kx, (batch, neurons[0]), jnp.float32)
    out = jax.block_until_ready(fcseq_forward(x, params))
    ref = fcseq_reference(x, params)
    assert out.shape == (batch, neurons[-1])
    assert jnp.allclose(out, ref, atol=1e-5, rtol=1e-5)

    # Ragged multi-tile path: 200 rows, 128-row tiles -> 2 grid steps (72-row tail
    # handled by the pipeline's boundary masking, no wrapper pad/slice).
    batch2 = 200
    x2 = jax.random.normal(kx2, (batch2, neurons[0]), jnp.float32)
    out2 = jax.block_until_ready(fcseq_forward(x2, params, row_tile=128))
    ref2 = fcseq_reference(x2, params)
    assert out2.shape == (batch2, neurons[-1])
    assert jnp.allclose(out2, ref2, atol=1e-5, rtol=1e-5)

    print("KERNEL_OK")
</pallas_src>

<mosaic_0001>
module attributes {stable_mosaic.version = 11 : i64} {
  func.func @_fcseq_kernel(%arg0: i32, %arg1: memref<8x16xf32, #tpu.memory_space<vmem>>, %arg2: memref<16x32xf32, #tpu.memory_space<vmem>>, %arg3: memref<1x32xf32, #tpu.memory_space<vmem>>, %arg4: memref<32x32xf32, #tpu.memory_space<vmem>>, %arg5: memref<1x32xf32, #tpu.memory_space<vmem>>, %arg6: memref<32x8xf32, #tpu.memory_space<vmem>>, %arg7: memref<1x8xf32, #tpu.memory_space<vmem>>, %arg8: memref<8x8xf32, #tpu.memory_space<vmem>>) attributes {dimension_semantics = [#tpu.dimension_semantics<parallel>], iteration_bounds = array<i64: 1>, scalar_prefetch = 0 : i64, scratch_operands = 0 : i64, tpu.core_type = #tpu.core_type<tc>, window_params = [{transform_indices = @transform_0, window_bounds = array<i64: 8, 16>}, {pipeline_mode = #tpu.pipeline_mode<synchronous>, transform_indices = @transform_1, window_bounds = array<i64: 16, 32>}, {pipeline_mode = #tpu.pipeline_mode<synchronous>, transform_indices = @transform_2, window_bounds = array<i64: 1, 32>}, {pipeline_mode = #tpu.pipeline_mode<synchronous>, transform_indices = @transform_3, window_bounds = array<i64: 32, 32>}, {pipeline_mode = #tpu.pipeline_mode<synchronous>, transform_indices = @transform_4, window_bounds = array<i64: 1, 32>}, {pipeline_mode = #tpu.pipeline_mode<synchronous>, transform_indices = @transform_5, window_bounds = array<i64: 32, 8>}, {pipeline_mode = #tpu.pipeline_mode<synchronous>, transform_indices = @transform_6, window_bounds = array<i64: 1, 8>}, {transform_indices = @transform_7, window_bounds = array<i64: 8, 8>}]} {
    %c0 = arith.constant 0 : index
    %c0_0 = arith.constant 0 : index
    %0 = vector.load %arg1[%c0, %c0_0] : memref<8x16xf32, #tpu.memory_space<vmem>>, vector<8x16xf32>
    %c0_1 = arith.constant 0 : index
    %c0_2 = arith.constant 0 : index
    %1 = vector.load %arg2[%c0_1, %c0_2] : memref<16x32xf32, #tpu.memory_space<vmem>>, vector<16x32xf32>
    %c0_3 = arith.constant 0 : index
    %c0_4 = arith.constant 0 : index
    %2 = vector.load %arg3[%c0_3, %c0_4] : memref<1x32xf32, #tpu.memory_space<vmem>>, vector<1x32xf32>
    %cst = arith.constant dense<0.000000e+00> : vector<8x32xf32>
    %3 = tpu.matmul %0, %1, %cst {dimension_numbers = #tpu.dot_dimension_numbers<[1], [0], [0], [1], [0, 0, 1, 1], [], []>} : vector<8x16xf32>, vector<16x32xf32>, vector<8x32xf32> -> vector<8x32xf32>
    %4 = vector.broadcast %2 : vector<1x32xf32> to vector<8x32xf32>
    %5 = arith.addf %3, %4 : vector<8x32xf32>
    %6 = math.sin %5 : vector<8x32xf32>
    %c0_5 = arith.constant 0 : index
    %c0_6 = arith.constant 0 : index
    %7 = vector.load %arg4[%c0_5, %c0_6] : memref<32x32xf32, #tpu.memory_space<vmem>>, vector<32x32xf32>
    %c0_7 = arith.constant 0 : index
    %c0_8 = arith.constant 0 : index
    %8 = vector.load %arg5[%c0_7, %c0_8] : memref<1x32xf32, #tpu.memory_space<vmem>>, vector<1x32xf32>
    %cst_9 = arith.constant dense<0.000000e+00> : vector<8x32xf32>
    %9 = tpu.matmul %6, %7, %cst_9 {dimension_numbers = #tpu.dot_dimension_numbers<[1], [0], [0], [1], [0, 0, 1, 1], [], []>} : vector<8x32xf32>, vector<32x32xf32>, vector<8x32xf32> -> vector<8x32xf32>
    %10 = vector.broadcast %8 : vector<1x32xf32> to vector<8x32xf32>
    %11 = arith.addf %9, %10 : vector<8x32xf32>
    %12 = math.sin %11 : vector<8x32xf32>
    %c0_10 = arith.constant 0 : index
    %c0_11 = arith.constant 0 : index
    %13 = vector.load %arg6[%c0_10, %c0_11] : memref<32x8xf32, #tpu.memory_space<vmem>>, vector<32x8xf32>
    %c0_12 = arith.constant 0 : index
    %c0_13 = arith.constant 0 : index
    %14 = vector.load %arg7[%c0_12, %c0_13] : memref<1x8xf32, #tpu.memory_space<vmem>>, vector<1x8xf32>
    %cst_14 = arith.constant dense<0.000000e+00> : vector<8x8xf32>
    %15 = tpu.matmul %12, %13, %cst_14 {dimension_numbers = #tpu.dot_dimension_numbers<[1], [0], [0], [1], [0, 0, 1, 1], [], []>} : vector<8x32xf32>, vector<32x8xf32>, vector<8x8xf32> -> vector<8x8xf32>
    %16 = vector.broadcast %14 : vector<1x8xf32> to vector<8x8xf32>
    %17 = arith.addf %15, %16 : vector<8x8xf32>
    %c0_15 = arith.constant 0 : index
    %c0_16 = arith.constant 0 : index
    %18 = vector.load %arg8[%c0_15, %c0_16] : memref<8x8xf32, #tpu.memory_space<vmem>>, vector<8x8xf32>
    tpu.vector_store %arg8[%c0_15, %c0_16], %17 {strides = array<i32>} : memref<8x8xf32, #tpu.memory_space<vmem>>, vector<8x8xf32>,
    return
  }
  func.func @transform_0(%arg0: i32) -> (i32, i32) {
    %c0_i32 = arith.constant 0 : i32
    %c0_i32_0 = arith.constant 0 : i32
    return %arg0, %c0_i32 : i32, i32
  }
  func.func @transform_1(%arg0: i32) -> (i32, i32) {
    %c0_i32 = arith.constant 0 : i32
    %c0_i32_0 = arith.constant 0 : i32
    %c0_i32_1 = arith.constant 0 : i32
    return %c0_i32, %c0_i32_0 : i32, i32
  }
  func.func @transform_2(%arg0: i32) -> (i32, i32) {
    %c0_i32 = arith.constant 0 : i32
    %c0_i32_0 = arith.constant 0 : i32
    %c0_i32_1 = arith.constant 0 : i32
    return %c0_i32, %c0_i32_0 : i32, i32
  }
  func.func @transform_3(%arg0: i32) -> (i32, i32) {
    %c0_i32 = arith.constant 0 : i32
    %c0_i32_0 = arith.constant 0 : i32
    %c0_i32_1 = arith.constant 0 : i32
    return %c0_i32, %c0_i32_0 : i32, i32
  }
  func.func @transform_4(%arg0: i32) -> (i32, i32) {
    %c0_i32 = arith.constant 0 : i32
    %c0_i32_0 = arith.constant 0 : i32
    %c0_i32_1 = arith.constant 0 : i32
    return %c0_i32, %c0_i32_0 : i32, i32
  }
  func.func @transform_5(%arg0: i32) -> (i32, i32) {
    %c0_i32 = arith.constant 0 : i32
    %c0_i32_0 = arith.constant 0 : i32
    %c0_i32_1 = arith.constant 0 : i32
    return %c0_i32, %c0_i32_0 : i32, i32
  }
  func.func @transform_6(%arg0: i32) -> (i32, i32) {
    %c0_i32 = arith.constant 0 : i32
    %c0_i32_0 = arith.constant 0 : i32
    %c0_i32_1 = arith.constant 0 : i32
    return %c0_i32, %c0_i32_0 : i32, i32
  }
  func.func @transform_7(%arg0: i32) -> (i32, i32) {
    %c0_i32 = arith.constant 0 : i32
    %c0_i32_0 = arith.constant 0 : i32
    return %arg0, %c0_i32 : i32, i32
  }
}

</mosaic_0001>

<bundles_post_ra>
// kernel: tpu_custom_call.1
= control target key start
LH: loop header
LB: loop body
LE: loop exit
PB: predicated region body
PF: predicated region fallthrough
CT: control target
= control target key end

     0   :  { %12 = vsyncpa [#allocation3], 0  ;;  %s766_s0 = inlined_call_operand.vmem [shape: f32[8,16], index: 0, kind: input, shape index: {}]   ;;  %s767_s1 = inlined_call_operand.hbm [shape: f32[16,32], index: 1, kind: input, shape index: {}]   ;;  %s768_s2 = inlined_call_operand.vmem [shape: f32[1,32], index: 2, kind: input, shape index: {}]   ;;  %s769_s3 = inlined_call_operand.vmem [shape: f32[32,32], index: 3, kind: input, shape index: {}]   ;;  %s770_s4 = inlined_call_operand.vmem [shape: f32[1,32], index: 4, kind: input, shape index: {}]   ;;  %s771_s5 = inlined_call_operand.vmem [shape: f32[32,8], index: 5, kind: input, shape index: {}]   ;;  %s772_s6 = inlined_call_operand.vmem [shape: f32[1,8], index: 6, kind: input, shape index: {}]   ;;  %s773_s7 = inlined_call_operand.hbm [shape: f32[8,8], index: 7, kind: output, shape index: {}]  }
   0x1   :  { %13 = vsyncpa [#allocation4], 0  ;;  %s20_s26 = sshll.u32 %s767_s1, 4  ;;  %s541_s27 = smov [#allocation2]   ;;  %s21_s26 = int_to_ptr.hbm [resolvable:$true] %s20_s26 }
   0x2   :  { %s22_s28 = sshll.u32 %s541_s27, 4  ;;  %s542_s29 = smov 128   ;;  %s23_s28 = int_to_ptr.vmem [resolvable:$true] %s22_s28 }
   0x3   :  { %s543_s30 = smov 8  }
   0x4   :  { %28 = dma.hbm_to_vmem [thread:$0]  %s21_s26, 256, %s23_s28, [#allocation3], %s542_s29, %s542_s29, %s543_s30  }
   0x5   :  { %537 = dma.done.wait [#allocation3], 256  }
   0x6   :  { %538 = vsyncadd [#allocation3], 4294967040  ;;  %v45_v0 = vld [vmem:[#allocation2 + $0x8] sm:$0xff]  ;;  %v44_v1 = vld [vmem:[#allocation2] sm:$0xff]  ;;  %vm50_vm0 = vcmask 130048   ;;  %s551_s26 = smov [#allocation5]  }
   0x7   :  { %68 = vmatpush.msra.mxu0 %v45_v0  ;;  %v43_v2 = vld [vmem:[%s766_s0] sm:$0xff]  ;;  %v232_v3 = vld [vmem:[%s769_s3 + $0x18] sm:$0xff]  ;;  %v231_v4 = vld [vmem:[%s769_s3 + $0x10] sm:$0xff]  ;;  %v544_v21 = vmov 683565275   ;;  %s454_s27 = sshll.u32 %s551_s26, 4  ;;  %s455_s27 = int_to_ptr.vmem [resolvable:$true] %s454_s27 }
   0x8   :  { %253 = vmatpush.msra.mxu1 %v232_v3  ;;  %v230_v5 = vld [vmem:[%s769_s3 + $0x8] sm:$0xff]  ;;  %v229_v6 = vld [vmem:[%s769_s3] sm:$0xff]  ;;  %v545_v23 = vmov 2475754826   ;;  %v546_v25 = vmov 2131351028  }
   0x9   :  { %69 = vmatpush.msra.mxu0 %v44_v1  ;;  %v486_v7 = vld [vmem:[%s768_s2] ss:$0 sm:$0xff]  ;;  %v547_v27 = vmov 2102212464   ;;  %v548_v32 = vmov 920167782  }
   0xa   :  { %466 = vmatmul.msk.f32.vlgmr.msra.gmra.mxu0 %vm50_vm0, %v43_v2  ;;  %254 = vmatpush.msra.mxu1 %v231_v4  ;;  %v549_v35 = vmov 1326507024   ;;  %s456_s30 = sshll.u32 %s773_s7, 4  ;;  %s457_s30 = int_to_ptr.hbm [resolvable:$true] %s456_s30 }
   0xc   :  { %255 = vmatpush.msra.mxu1 %v230_v5 }
   0xe   :  { %256 = vmatpush.msra.mxu1 %v229_v6 }
  0x87   :  { %v71_v8 = vpop.f32.mrf.mxu0 }
  0x88   :  { %v613_v9 = vadd.f32 %v486_v7, %v71_v8  ;;  %v550_v7 = vmov 0  }
  0x8a   :  { %v77_v10 = vand.u32 2139095040, %v613_v9  ;;  %v74_v12 = vand.u32 2147483647, %v613_v9  ;;  %vm76_vm13 = vcmp.lt.s32.totalorder %v613_v9, 0 }
  0x8c   :  { %v78_v11 = vshrl.u32 %v77_v10, 23  ;;  %v81_v15 = vand.u32 8388607, %v74_v12  ;;  %vm75_vm14 = vcmp.le.f32.partialorder %v74_v12, 0.7853982 }
  0x8e   :  { %v467_v13 = vadd.s32 4294967169, %v78_v11  ;;  %v82_v18 = vor.u32 8388608, %v81_v15 }
  0x90   :  { %v84_v14 = vadd.s32 1, %v467_v13  ;;  %v638_v37 = vshll.u32 %v82_v18, 8 }
  0x92   :  { %vm85_vm1 = vcmp.gt.s32.totalorder %v84_v14, 0  ;;  %v123_v49 = vand.u32 65535, %v638_v37  ;;  %v124_v51 = vshrl.u32 %v638_v37, 16 }
  0x93   :  { %v86_v16 = vsel %vm85_vm1, %v84_v14, 0 }
  0x94   :  { %v88_v17 = vand.u32 31, %v86_v16  ;;  %v619_v19 = vshrl.u32 %v86_v16, 5 }
  0x96   :  { %v621_v20 = vsub.s32 32, %v88_v17  ;;  %v91_v22 = vshll.u32 %v544_v21, %v88_v17  ;;  %v94_v24 = vshll.u32 %v545_v23, %v88_v17  ;;  %v97_v26 = vshll.u32 %v546_v25, %v88_v17 }
  0x97   :  { %v100_v28 = vshll.u32 %v547_v27, %v88_v17  ;;  %v103_v34 = vshll.u32 %v548_v32, %v88_v17  ;;  %vm106_vm2 = vcmp.lt.s32.totalorder %v619_v19, 1  ;;  %vm109_vm3 = vcmp.lt.s32.totalorder %v619_v19, 4 }
  0x98   :  { %v92_v29 = vshrl.u32 %v545_v23, %v621_v20  ;;  %v95_v30 = vshrl.u32 %v546_v25, %v621_v20  ;;  %v98_v31 = vshrl.u32 %v547_v27, %v621_v20  ;;  %v101_v33 = vshrl.u32 %v548_v32, %v621_v20 }
  0x99   :  { %v104_v36 = vshrl.u32 %v549_v35, %v621_v20  ;;  %vm108_vm4 = vcmp.lt.s32.totalorder %v619_v19, 3  ;;  %vm107_vm5 = vcmp.lt.s32.totalorder %v619_v19, 2  ;;  %v90_v14 = vshrl.u32 %v544_v21, %v621_v20 }
  0x9a   :  { %v93_v38 = vor.u32 %v92_v29, %v91_v22  ;;  %v96_v39 = vor.u32 %v95_v30, %v94_v24  ;;  %v99_v40 = vor.u32 %v98_v31, %v97_v26  ;;  %v102_v41 = vor.u32 %v101_v33, %v100_v28 }
  0x9b   :  { %v105_v42 = vor.u32 %v104_v36, %v103_v34 }
  0x9c   :  { %v114_v43 = vsel %vm106_vm2, %v93_v38, %v96_v39  ;;  %v115_v44 = vsel %vm109_vm3, %v102_v41, 920167782  ;;  %v118_v45 = vsel %vm106_vm2, %v96_v39, %v99_v40  ;;  %v111_v10 = vsel %vm109_vm3, %v99_v40, 2102212464 }
  0x9d   :  { %v116_v46 = vsel %vm108_vm4, %v99_v40, %v115_v44  ;;  %v119_v47 = vsel %vm109_vm3, %v105_v42, 1326507024  ;;  %v110_v24 = vsel %vm106_vm2, %v90_v14, %v93_v38  ;;  %v112_v26 = vsel %vm108_vm4, %v96_v39, %v111_v10 }
  0x9e   :  { %v120_v48 = vsel %vm108_vm4, %v102_v41, %v119_v47  ;;  %v117_v50 = vsel %vm107_vm5, %v114_v43, %v116_v46  ;;  %v113_v34 = vsel %vm107_vm5, %v110_v24, %v112_v26  ;;  %vm237_vm2 = vcmask 261120  }
  0x9f   :  { %v121_v52 = vsel %vm107_vm5, %v118_v45, %v120_v48  ;;  %v147_v53 = vand.u32 65535, %v117_v50  ;;  %v148_v54 = vshrl.u32 %v117_v50, 16  ;;  %v167_v43 = vmul.u32 %v638_v37, %v113_v34 }
  0xa0   :  { %v125_v55 = vand.u32 65535, %v121_v52  ;;  %v126_v56 = vshrl.u32 %v121_v52, 16  ;;  %vm217_vm3 = vweird.f32 %v613_v9 }
  0xa1   :  { %v150_v57 = vmul.u32 %v148_v54, %v123_v49  ;;  %v151_v58 = vmul.u32 %v147_v53, %v124_v51  ;;  %v149_v61 = vmul.u32 %v147_v53, %v123_v49  ;;  %v152_v1 = vmul.u32 %v148_v54, %v124_v51 }
  0xa2   :  { %v128_v59 = vmul.u32 %v126_v56, %v123_v49  ;;  %v129_v60 = vmul.u32 %v125_v55, %v124_v51  ;;  %v127_v63 = vmul.u32 %v125_v55, %v123_v49  ;;  %v130_v2 = vmul.u32 %v126_v56, %v124_v51 }
  0xa3   :  { %v153_v62 = vshll.u32 %v150_v57, 16  ;;  %v155_v3 = vshll.u32 %v151_v58, 16  ;;  %v154_v18 = vshrl.u32 %v150_v57, 16  ;;  %v156_v30 = vshrl.u32 %v151_v58, 16 }
  0xa4   :  { %v131_v0 = vshll.u32 %v128_v59, 16  ;;  %v133_v5 = vshll.u32 %v129_v60, 16  ;;  %v132_v28 = vshrl.u32 %v128_v59, 16  ;;  %v134_v33 = vshrl.u32 %v129_v60, 16 }
  0xa5   :  { %vm157_vm6 = vc.u32 %v149_v61, %v153_v62  ;;  %v159_v4 = vadd.s32 %v153_v62, %v149_v61 }
  0xa6   :  { %vm135_vm7 = vc.u32 %v127_v63, %v131_v0  ;;  %v137_v6 = vadd.s32 %v131_v0, %v127_v63  ;;  %v158_v8 = vsel %vm157_vm6, 1, %v550_v7 }
  0xa7   :  { %v136_v11 = vsel %vm135_vm7, 1, %v550_v7  ;;  %v160_v13 = vadd.s32 %v158_v8, %v152_v1  ;;  %vm161_vm8 = vc.u32 %v159_v4, %v155_v3  ;;  %v163_v41 = vadd.s32 %v159_v4, %v155_v3 }
  0xa8   :  { %v138_v15 = vadd.s32 %v136_v11, %v130_v2  ;;  %vm139_vm9 = vc.u32 %v137_v6, %v133_v5  ;;  %v162_v16 = vsel %vm161_vm8, 1, %v550_v7 }
  0xa9   :  { %v140_v17 = vsel %vm139_vm9, 1, %v550_v7  ;;  %v164_v22 = vadd.s32 %v162_v16, %v160_v13 }
  0xaa   :  { %v142_v29 = vadd.s32 %v140_v17, %v138_v15 }
  0xab   :  { %v165_v31 = vadd.s32 %v164_v22, %v154_v18 }
  0xac   :  { %v143_v20 = vadd.s32 %v142_v29, %v132_v28 }
  0xad   :  { %v166_v36 = vadd.s32 %v165_v31, %v156_v30 }
  0xae   :  { %v144_v40 = vadd.s32 %v143_v20, %v134_v33 }
  0xaf   :  { %v170_v42 = vadd.s32 1, %v166_v36 }
  0xb0   :  { %vm169_vm10 = vc.u32 %v144_v40, %v163_v41  ;;  %v168_v52 = vadd.s32 %v163_v41, %v144_v40  ;;  %v418_v40 = vld [vmem:[%s771_s5 + $0x10] sm:$0xff]  ;;  %v417_v41 = vld [vmem:[%s771_s5 + $0x8] sm:$0xff] }
  0xb1   :  { %v171_v38 = vsel %vm169_vm10, %v170_v42, %v166_v36  ;;  %v419_v36 = vld [vmem:[%s771_s5 + $0x18] sm:$0xff]  ;;  %v487_v42 = vld [vmem:[%s770_s4] ss:$0 sm:$0xff] }
  0xb2   :  { %v172_v44 = vadd.s32 %v171_v38, %v167_v43  ;;  %439 = vmatpush.msra.mxu2 %v419_v36 }
  0xb4   :  { %v173_v45 = vadd.s32 536870912, %v172_v44  ;;  %440 = vmatpush.msra.mxu2 %v418_v40 }
  0xb6   :  { %v174_v39 = vshrl.u32 %v173_v45, 30  ;;  %441 = vmatpush.msra.mxu2 %v417_v41 }
  0xb8   :  { %v175_v46 = vshll.u32 %v174_v39, 30  ;;  %v198_v1 = vsub.s32 4, %v174_v39 }
  0xba   :  { %v176_v47 = vsub.s32 %v172_v44, %v175_v46  ;;  %v199_v6 = vsel %vm76_vm13, %v198_v1, %v174_v39 }
  0xbb   :  { %v201_v11 = vsel %vm75_vm14, 0, %v199_v6 }
  0xbc   :  { %vm177_vm11 = vcmp.lt.s32.totalorder %v176_v47, 0  ;;  %v178_v48 = vsub.s32 0, %v176_v47  ;;  %v218_v17 = vadd.s32 3, %v201_v11 }
  0xbe   :  { %v179_v49 = vsel %vm177_vm11, %v178_v48, %v176_v47  ;;  %v219_v26 = vand.u32 3, %v218_v17 }
  0xbf   :  { %v180_v50 = vclz %v179_v49 }
  0xc0   :  { %vm221_vm15 = vcmp.eq.s32.totalorder %v219_v26, 0  ;;  %vm224_vm0 = vcmp.eq.s32.totalorder %v219_v26, 2  ;;  %vm220_vm1 = vcmp.lt.s32.totalorder %v219_v26, 2 }
  0xc1   :  { %v468_v51 = vadd.s32 4294967294, %v180_v50 }
  0xc3   :  { %vm469_vm12 = vcmp.lt.s32.totalorder %v468_v51, 0 }
  0xc4   :  { %v183_v19 = vsel %vm469_vm12, 0, %v468_v51 }
  0xc5   :  { %v184_v53 = vsub.s32 32, %v183_v19  ;;  %v188_v54 = vsub.s32 4294967266, %v183_v19  ;;  %v185_v55 = vshll.u32 %v176_v47, %v183_v19 }
  0xc7   :  { %v186_v56 = vshrl.u32 %v168_v52, %v184_v53  ;;  %v189_v37 = vadd.s32 127, %v188_v54 }
  0xc9   :  { %v187_v57 = vor.u32 %v186_v56, %v185_v55  ;;  %v190_v58 = vshll.u32 %v189_v37, 23 }
  0xcb   :  { %v191_v59 = vor.u32 4788187, %v190_v58  ;;  %v194_v61 = vcvt.s32.f32 %v187_v57 }
  0xcd   :  { %v192_v60 = vand.u32 2147483647, %v191_v59 }
  0xcf   :  { %v195_v62 = vmul.f32 %v194_v61, %v192_v60 }
  0xd1   :  { %v196_v63 = vxor.u32 2147483648, %v195_v62 }
  0xd3   :  { %v197_v0 = vsel %vm76_vm13, %v196_v63, %v195_v62 }
  0xd4   :  { %v200_v2 = vsel %vm75_vm14, %v613_v9, %v197_v0  ;;  %v416_v9 = vld [vmem:[%s771_s5] sm:$0xff] }
  0xd5   :  { %v202_v3 = vmul.f32 %v200_v2, %v200_v2  ;;  %442 = vmatpush.msra.mxu2 %v416_v9 }
  0xd7   :  { %v203_v4 = vmul.f32 -0.001358992, %v202_v3  ;;  %v210_v5 = vmul.f32 -0.00019511016, %v202_v3 }
  0xd9   :  { %v204_v8 = vadd.f32 0.041655596, %v203_v4  ;;  %v211_v10 = vadd.f32 0.008332121, %v210_v5 }
  0xdb   :  { %v205_v13 = vmul.f32 %v204_v8, %v202_v3  ;;  %v212_v14 = vmul.f32 %v211_v10, %v202_v3 }
  0xdd   :  { %v206_v15 = vadd.f32 -0.4999988, %v205_v13  ;;  %v213_v16 = vadd.f32 -0.16666654, %v212_v14 }
  0xdf   :  { %v207_v18 = vmul.f32 %v206_v15, %v202_v3  ;;  %v214_v22 = vmul.f32 %v213_v16, %v202_v3 }
  0xe1   :  { %v208_v24 = vadd.f32 1.0, %v207_v18  ;;  %v215_v12 = vadd.f32 1.0, %v214_v22 }
  0xe3   :  { %v216_v28 = vmul.f32 %v215_v12, %v200_v2  ;;  %v225_v29 = vxor.u32 2147483648, %v208_v24 }
  0xe5   :  { %v222_v30 = vxor.u32 2147483648, %v216_v28  ;;  %v226_v33 = vsel %vm224_vm0, %v225_v29, %v216_v28 }
  0xe7   :  { %v223_v31 = vsel %vm221_vm15, %v208_v24, %v222_v30 }
  0xe8   :  { %v227_v20 = vsel %vm220_vm1, %v223_v31, %v226_v33 }
  0xe9   :  { %v228_v34 = vsel %vm217_vm3, nan, %v227_v20 }
  0xea   :  { %470 = vmatmul.msk.f32.vlgmr.msra.gmra.mxu1 %vm237_vm2, %v228_v34 }
 0x167   :  { %v258_v43 = vpop.f32.mrf.mxu1 }
 0x168   :  { %v698_v38 = vadd.f32 %v487_v42, %v258_v43 }
 0x16a   :  { %v264_v44 = vand.u32 2139095040, %v698_v38  ;;  %v261_v39 = vand.u32 2147483647, %v698_v38  ;;  %vm263_vm0 = vcmp.lt.s32.totalorder %v698_v38, 0 }
 0x16c   :  { %v265_v45 = vshrl.u32 %v264_v44, 23  ;;  %v268_v48 = vand.u32 8388607, %v261_v39  ;;  %vm262_vm1 = vcmp.le.f32.partialorder %v261_v39, 0.7853982 }
 0x16e   :  { %v471_v46 = vadd.s32 4294967169, %v265_v45  ;;  %v269_v51 = vor.u32 8388608, %v268_v48 }
 0x170   :  { %v271_v47 = vadd.s32 1, %v471_v46  ;;  %v716_v62 = vshll.u32 %v269_v51, 8 }
 0x172   :  { %vm272_vm4 = vcmp.gt.s32.totalorder %v271_v47, 0  ;;  %v310_v5 = vand.u32 65535, %v716_v62  ;;  %v311_v8 = vshrl.u32 %v716_v62, 16 }
 0x173   :  { %v273_v49 = vsel %vm272_vm4, %v271_v47, 0 }
 0x174   :  { %v275_v50 = vand.u32 31, %v273_v49  ;;  %v704_v19 = vshrl.u32 %v273_v49, 5 }
 0x176   :  { %v276_v52 = vsub.s32 32, %v275_v50  ;;  %v278_v53 = vshll.u32 %v544_v21, %v275_v50  ;;  %v281_v54 = vshll.u32 %v545_v23, %v275_v50  ;;  %v284_v55 = vshll.u32 %v546_v25, %v275_v50 }
 0x177   :  { %v287_v56 = vshll.u32 %v547_v27, %v275_v50  ;;  %v290_v60 = vshll.u32 %v548_v32, %v275_v50  ;;  %vm293_vm5 = vcmp.lt.s32.totalorder %v704_v19, 1  ;;  %vm296_vm6 = vcmp.lt.s32.totalorder %v704_v19, 4 }
 0x178   :  { %v279_v37 = vshrl.u32 %v545_v23, %v276_v52  ;;  %v282_v57 = vshrl.u32 %v546_v25, %v276_v52  ;;  %v285_v58 = vshrl.u32 %v547_v27, %v276_v52  ;;  %v288_v59 = vshrl.u32 %v548_v32, %v276_v52 }
 0x179   :  { %v291_v61 = vshrl.u32 %v549_v35, %v276_v52  ;;  %vm295_vm7 = vcmp.lt.s32.totalorder %v704_v19, 3  ;;  %vm294_vm8 = vcmp.lt.s32.totalorder %v704_v19, 2  ;;  %v277_v42 = vshrl.u32 %v544_v21, %v276_v52 }
 0x17a   :  { %v280_v63 = vor.u32 %v279_v37, %v278_v53  ;;  %v283_v0 = vor.u32 %v282_v57, %v281_v54  ;;  %v286_v1 = vor.u32 %v285_v58, %v284_v55  ;;  %v289_v2 = vor.u32 %v288_v59, %v287_v56 }
 0x17b   :  { %v292_v3 = vor.u32 %v291_v61, %v290_v60 }
 0x17c   :  { %v301_v23 = vsel %vm293_vm5, %v280_v63, %v283_v0  ;;  %v302_v25 = vsel %vm296_vm6, %v289_v2, 920167782  ;;  %v305_v27 = vsel %vm293_vm5, %v283_v0, %v286_v1  ;;  %v298_v40 = vsel %vm296_vm6, %v286_v1, 2102212464 }
 0x17d   :  { %v303_v32 = vsel %vm295_vm7, %v286_v1, %v302_v25  ;;  %v306_v35 = vsel %vm296_vm6, %v292_v3, 1326507024  ;;  %v297_v48 = vsel %vm293_vm5, %v277_v42, %v280_v63  ;;  %v299_v49 = vsel %vm295_vm7, %v283_v0, %v298_v40 }
 0x17e   :  { %v307_v4 = vsel %vm295_vm7, %v289_v2, %v306_v35  ;;  %v304_v6 = vsel %vm294_vm8, %v301_v23, %v303_v32  ;;  %v300_v52 = vsel %vm294_vm8, %v297_v48, %v299_v49  ;;  %vm404_vm6 = vweird.f32 %v698_v38 }
 0x17f   :  { %v308_v10 = vsel %vm294_vm8, %v305_v27, %v307_v4  ;;  %v334_v11 = vand.u32 65535, %v304_v6  ;;  %v335_v13 = vshrl.u32 %v304_v6, 16  ;;  %v354_v58 = vmul.u32 %v716_v62, %v300_v52 }
 0x180   :  { %v312_v14 = vand.u32 65535, %v308_v10  ;;  %v313_v15 = vshrl.u32 %v308_v10, 16  ;;  %vm447_vm7 = vcmask 64512  }
 0x181   :  { %v337_v16 = vmul.u32 %v335_v13, %v310_v5  ;;  %v338_v17 = vmul.u32 %v334_v11, %v311_v8  ;;  %v336_v24 = vmul.u32 %v334_v11, %v310_v5  ;;  %v339_v29 = vmul.u32 %v335_v13, %v311_v8 }
 0x182   :  { %v315_v18 = vmul.u32 %v313_v15, %v310_v5  ;;  %v316_v22 = vmul.u32 %v312_v14, %v311_v8  ;;  %v314_v26 = vmul.u32 %v312_v14, %v310_v5  ;;  %v317_v30 = vmul.u32 %v313_v15, %v311_v8 }
 0x183   :  { %v340_v12 = vshll.u32 %v337_v16, 16  ;;  %v342_v31 = vshll.u32 %v338_v17, 16  ;;  %v341_v46 = vshrl.u32 %v337_v16, 16  ;;  %v343_v53 = vshrl.u32 %v338_v17, 16 }
 0x184   :  { %v318_v28 = vshll.u32 %v315_v18, 16  ;;  %v320_v20 = vshll.u32 %v316_v22, 16  ;;  %v319_v50 = vshrl.u32 %v315_v18, 16  ;;  %v321_v55 = vshrl.u32 %v316_v22, 16 }
 0x185   :  { %vm344_vm9 = vc.u32 %v336_v24, %v340_v12  ;;  %v346_v33 = vadd.s32 %v340_v12, %v336_v24 }
 0x186   :  { %vm322_vm10 = vc.u32 %v314_v26, %v318_v28  ;;  %v324_v34 = vadd.s32 %v318_v28, %v314_v26  ;;  %v345_v36 = vsel %vm344_vm9, 1, %v550_v7 }
 0x187   :  { %v323_v41 = vsel %vm322_vm10, 1, %v550_v7  ;;  %v347_v9 = vadd.s32 %v345_v36, %v339_v29  ;;  %vm348_vm11 = vc.u32 %v346_v33, %v342_v31 }
 0x188   :  { %v325_v43 = vadd.s32 %v323_v41, %v317_v30  ;;  %vm326_vm12 = vc.u32 %v324_v34, %v320_v20  ;;  %v349_v44 = vsel %vm348_vm11, 1, %v550_v7 }
 0x189   :  { %v327_v45 = vsel %vm326_vm12, 1, %v550_v7  ;;  %v351_v47 = vadd.s32 %v349_v44, %v347_v9  ;;  %v350_v7 = vadd.s32 %v346_v33, %v342_v31 }
 0x18a   :  { %v329_v51 = vadd.s32 %v327_v45, %v325_v43 }
 0x18b   :  { %v352_v54 = vadd.s32 %v351_v47, %v341_v46 }
 0x18c   :  { %v330_v21 = vadd.s32 %v329_v51, %v319_v50  ;;  %v488_v50 = vld [vmem:[%s772_s6] ss:$0 sm:$0xff] }
 0x18d   :  { %v353_v56 = vadd.s32 %v352_v54, %v343_v53 }
 0x18e   :  { %v331_v37 = vadd.s32 %v330_v21, %v321_v55 }
 0x18f   :  { %v357_v57 = vadd.s32 1, %v353_v56 }
 0x190   :  { %vm356_vm13 = vc.u32 %v331_v37, %v350_v7  ;;  %v355_v27 = vadd.s32 %v350_v7, %v331_v37 }
 0x191   :  { %v358_v59 = vsel %vm356_vm13, %v357_v57, %v353_v56 }
 0x192   :  { %v359_v60 = vadd.s32 %v358_v59, %v354_v58 }
 0x194   :  { %v360_v61 = vadd.s32 536870912, %v359_v60 }
 0x196   :  { %v361_v63 = vshrl.u32 %v360_v61, 30 }
 0x198   :  { %v362_v0 = vshll.u32 %v361_v63, 30  ;;  %v385_v17 = vsub.s32 4, %v361_v63 }
 0x19a   :  { %v363_v1 = vsub.s32 %v359_v60, %v362_v0  ;;  %v386_v26 = vsel %vm263_vm0, %v385_v17, %v361_v63 }
 0x19b   :  { %v388_v30 = vsel %vm262_vm1, 0, %v386_v26 }
 0x19c   :  { %vm364_vm14 = vcmp.lt.s32.totalorder %v363_v1, 0  ;;  %v365_v2 = vsub.s32 0, %v363_v1  ;;  %v405_v36 = vadd.s32 3, %v388_v30 }
 0x19e   :  { %v366_v3 = vsel %vm364_vm14, %v365_v2, %v363_v1  ;;  %v406_v42 = vand.u32 3, %v405_v36 }
 0x19f   :  { %v367_v23 = vclz %v366_v3 }
 0x1a0   :  { %vm408_vm3 = vcmp.eq.s32.totalorder %v406_v42, 0  ;;  %vm411_vm4 = vcmp.eq.s32.totalorder %v406_v42, 2  ;;  %vm407_vm5 = vcmp.lt.s32.totalorder %v406_v42, 2 }
 0x1a1   :  { %v472_v25 = vadd.s32 4294967294, %v367_v23 }
 0x1a3   :  { %vm473_vm15 = vcmp.lt.s32.totalorder %v472_v25, 0 }
 0x1a4   :  { %v370_v19 = vsel %vm473_vm15, 0, %v472_v25 }
 0x1a5   :  { %v371_v32 = vsub.s32 32, %v370_v19  ;;  %v375_v35 = vsub.s32 4294967266, %v370_v19  ;;  %v372_v4 = vshll.u32 %v363_v1, %v370_v19 }
 0x1a7   :  { %v373_v5 = vshrl.u32 %v355_v27, %v371_v32  ;;  %v376_v62 = vadd.s32 127, %v375_v35 }
 0x1a9   :  { %v374_v6 = vor.u32 %v373_v5, %v372_v4  ;;  %v377_v8 = vshll.u32 %v376_v62, 23 }
 0x1ab   :  { %v378_v10 = vor.u32 4788187, %v377_v8  ;;  %v381_v13 = vcvt.s32.f32 %v374_v6 }
 0x1ad   :  { %v379_v11 = vand.u32 2147483647, %v378_v10 }
 0x1af   :  { %v382_v14 = vmul.f32 %v381_v13, %v379_v11 }
 0x1b1   :  { %v383_v15 = vxor.u32 2147483648, %v382_v14 }
 0x1b3   :  { %v384_v16 = vsel %vm263_vm0, %v383_v15, %v382_v14 }
 0x1b4   :  { %v387_v18 = vsel %vm262_vm1, %v698_v38, %v384_v16 }
 0x1b5   :  { %v389_v22 = vmul.f32 %v387_v18, %v387_v18 }
 0x1b7   :  { %v390_v24 = vmul.f32 -0.001358992, %v389_v22  ;;  %v397_v12 = vmul.f32 -0.00019511016, %v389_v22 }
 0x1b9   :  { %v391_v28 = vadd.f32 0.041655596, %v390_v24  ;;  %v398_v29 = vadd.f32 0.008332121, %v397_v12 }
 0x1bb   :  { %v392_v31 = vmul.f32 %v391_v28, %v389_v22  ;;  %v399_v33 = vmul.f32 %v398_v29, %v389_v22 }
 0x1bd   :  { %v393_v20 = vadd.f32 -0.4999988, %v392_v31  ;;  %v400_v34 = vadd.f32 -0.16666654, %v399_v33 }
 0x1bf   :  { %v394_v40 = vmul.f32 %v393_v20, %v389_v22  ;;  %v401_v41 = vmul.f32 %v400_v34, %v389_v22 }
 0x1c1   :  { %v395_v9 = vadd.f32 1.0, %v394_v40  ;;  %v402_v39 = vadd.f32 1.0, %v401_v41 }
 0x1c3   :  { %v403_v43 = vmul.f32 %v402_v39, %v387_v18  ;;  %v412_v44 = vxor.u32 2147483648, %v395_v9 }
 0x1c5   :  { %v409_v45 = vxor.u32 2147483648, %v403_v43  ;;  %v413_v47 = vsel %vm411_vm4, %v412_v44, %v403_v43 }
 0x1c7   :  { %v410_v46 = vsel %vm408_vm3, %v395_v9, %v409_v45 }
 0x1c8   :  { %v414_v48 = vsel %vm407_vm5, %v410_v46, %v413_v47 }
 0x1c9   :  { %v415_v49 = vsel %vm404_vm6, nan, %v414_v48 }
 0x1ca   :  { %474 = vmatmul.msk.f32.vlgmr.msra.gmra.mxu2 %vm237_vm2, %v415_v49 }
 0x24d   :  { %v444_v51 = vpop.f32.mrf.mxu2 }
 0x24e   :  { %v445_v53 = vadd.f32 %v488_v50, %v444_v51 }
 0x250   :  { %448 = vst.msk [vmem:[#allocation5] sm:$0xff] %vm447_vm7, %v445_v53 }
 0x251   :  { %459 = dma.vmem_to_hbm [thread:$0]  %s455_s27, 128, %s457_s30, [#allocation4]  }
 0x252   :  { %539 = dma.done.wait [#allocation4], 128  }
 0x253   :  { %540 = vsyncadd [#allocation4], 4294967168 }
 0x254   :  { %464 = vsyncpa [#allocation3], 1 }
 0x255   :  { %465 = vsyncpa [#allocation4], 1 }

</bundles_post_ra>
